<compile_context>
chip_gen: v6e
topology: v6e:2x2x1
jax: 0.10.0
libtpu: 0.0.40
codegen_flags: <defaults>
</compile_context>

<pallas_src>
import jax
import jax.numpy as jnp
from jax.experimental import pallas as pl
from jax.experimental.pallas import tpu as pltpu


def _mlp_kernel(enc_ref, w1_ref, b1_ref, w2_ref, b2_ref, out_ref):
    # enc_ref: (B, E)   w1_ref: (E, H)   b1_ref: (1, H)
    # w2_ref: (H, tn)   b2_ref: (1, tn)  out_ref: (B, tn)
    h = jnp.dot(enc_ref[...], w1_ref[...],
                preferred_element_type=jnp.float32) + b1_ref[...]
    # LeakyReLU(0.2)
    h = jnp.where(h > 0, h, 0.2 * h)
    out = jnp.dot(h, w2_ref[...],
                  preferred_element_type=jnp.float32) + b2_ref[...]
    out_ref[...] = out.astype(out_ref.dtype)


def _pick_tile(N, H, B, bytes_per_elem=4, vmem_budget=24 << 20):
    """Largest lane-dense column tile whose double-buffered working set fits
    the VMEM budget (kept under the explicit 32 MiB vmem_limit_bytes below,
    which is safe on v5e/v6e/v7x)."""
    # Per output column (double-buffered): W2 tile + b2 tile + out tile.
    per_col = 2 * (H + 1 + B) * bytes_per_elem
    max_cols = max(128, vmem_budget // per_col)
    if N <= max_cols:
        return N                      # one grid step — the common (small) case
    # Otherwise: largest multiple-of-128 divisor of N that fits the budget
    # (lane-dense, unmasked vst stores).
    t = (max_cols // 128) * 128
    while t >= 128:
        if N % t == 0:
            return t
        t -= 128
    # No divisor found (N not a multiple of 128); fall back to a single block.
    return N


def linear_template_forward(encoding, w1, b1, w2, b2,
                            out_channels, template_res, *, tn=None):
    """Pallas implementation of LinearTemplate.forward."""
    B, E = encoding.shape
    H = w1.shape[1]                       # hidden = 8
    N = w2.shape[1]                       # template_res**3 * out_channels
    if tn is None:
        tn = _pick_tile(N, H, B)
    tn = min(tn, N)
    assert N % tn == 0, (N, tn)

    b1_2d = b1.reshape(1, H)
    b2_2d = b2.reshape(1, N)

    grid = (N // tn,)
    flat = pl.pallas_call(
        _mlp_kernel,
        out_shape=jax.ShapeDtypeStruct((B, N), encoding.dtype),
        grid_spec=pl.GridSpec(
            grid=grid,
            in_specs=[
                pl.BlockSpec((B, E), lambda j: (0, 0)),     # encoding (full)
                pl.BlockSpec((E, H), lambda j: (0, 0)),     # W1 (full)
                pl.BlockSpec((1, H), lambda j: (0, 0)),     # b1 (full)
                pl.BlockSpec((H, tn), lambda j: (0, j)),    # W2 column tile
                pl.BlockSpec((1, tn), lambda j: (0, j)),    # b2 tile
            ],
            out_specs=pl.BlockSpec((B, tn), lambda j: (0, j)),
        ),
        compiler_params=pltpu.CompilerParams(
            # Parallel axis: a no-op when grid=(1,); lets Mosaic shard column
            # tiles across both TensorCores on v7x when N is large.
            dimension_semantics=("parallel",),
            # Raise scoped VMEM so the 24 MiB tile budget fits everywhere.
            vmem_limit_bytes=32 << 20,
        ),
    )(encoding, w1, b1_2d, w2, b2_2d)

    return flat.reshape(-1, out_channels, template_res, template_res,
                        template_res)


if __name__ == "__main__":
    # Small, consistent shapes: encoding_size=32, out_channels=4,
    # template_res=8 -> wide output dim N = 8**3 * 4 = 2048.
    batch = 2
    encoding_size = 32
    out_channels = 4
    template_res = 8
    hidden = 8
    N = template_res ** 3 * out_channels

    key = jax.random.PRNGKey(0)
    k_enc, k_w1, k_b1, k_w2, k_b2 = jax.random.split(key, 5)

    encoding = jax.random.normal(k_enc, (batch, encoding_size), jnp.float32)
    # Deterministic synthetic parameter init (stand-in for models.utils.initseq,
    # which only affects initialization, not the forward pass).
    w1 = jax.random.normal(k_w1, (encoding_size, hidden), jnp.float32) * 0.1
    b1 = jax.random.normal(k_b1, (hidden,), jnp.float32) * 0.01
    w2 = jax.random.normal(k_w2, (hidden, N), jnp.float32) * 0.1
    b2 = jax.random.normal(k_b2, (N,), jnp.float32) * 0.01

    out = linear_template_forward(encoding, w1, b1, w2, b2,
                                  out_channels, template_res)
    out = jax.block_until_ready(out)

    # Pure-JAX reference check.
    h_ref = encoding @ w1 + b1
    h_ref = jnp.where(h_ref > 0, h_ref, 0.2 * h_ref)
    ref = (h_ref @ w2 + b2).reshape(-1, out_channels, template_res,
                                    template_res, template_res)
    assert out.shape == (batch, out_channels, template_res, template_res,
                         template_res)
    assert jnp.allclose(out, ref, atol=1e-4, rtol=1e-4)

    print("KERNEL_OK")
</pallas_src>

<mosaic_0001>
module attributes {stable_mosaic.version = 11 : i64} {
  func.func @_mlp_kernel(%arg0: i32, %arg1: memref<2x32xf32, #tpu.memory_space<vmem>>, %arg2: memref<32x8xf32, #tpu.memory_space<vmem>>, %arg3: memref<1x8xf32, #tpu.memory_space<vmem>>, %arg4: memref<8x2048xf32, #tpu.memory_space<vmem>>, %arg5: memref<1x2048xf32, #tpu.memory_space<vmem>>, %arg6: memref<2x2048xf32, #tpu.memory_space<vmem>>) attributes {dimension_semantics = [#tpu.dimension_semantics<parallel>], iteration_bounds = array<i64: 1>, scalar_prefetch = 0 : i64, scratch_operands = 0 : i64, tpu.core_type = #tpu.core_type<tc>, window_params = [{pipeline_mode = #tpu.pipeline_mode<synchronous>, transform_indices = @transform_0, window_bounds = array<i64: 2, 32>}, {pipeline_mode = #tpu.pipeline_mode<synchronous>, transform_indices = @transform_1, window_bounds = array<i64: 32, 8>}, {pipeline_mode = #tpu.pipeline_mode<synchronous>, transform_indices = @transform_2, window_bounds = array<i64: 1, 8>}, {transform_indices = @transform_3, window_bounds = array<i64: 8, 2048>}, {transform_indices = @transform_4, window_bounds = array<i64: 1, 2048>}, {transform_indices = @transform_5, window_bounds = array<i64: 2, 2048>}]} {
    %c0 = arith.constant 0 : index
    %c0_0 = arith.constant 0 : index
    %0 = vector.load %arg1[%c0, %c0_0] : memref<2x32xf32, #tpu.memory_space<vmem>>, vector<2x32xf32>
    %c0_1 = arith.constant 0 : index
    %c0_2 = arith.constant 0 : index
    %1 = vector.load %arg2[%c0_1, %c0_2] : memref<32x8xf32, #tpu.memory_space<vmem>>, vector<32x8xf32>
    %cst = arith.constant dense<0.000000e+00> : vector<2x8xf32>
    %2 = tpu.matmul %0, %1, %cst {dimension_numbers = #tpu.dot_dimension_numbers<[1], [0], [0], [1], [0, 0, 1, 1], [], []>} : vector<2x32xf32>, vector<32x8xf32>, vector<2x8xf32> -> vector<2x8xf32>
    %c0_3 = arith.constant 0 : index
    %c0_4 = arith.constant 0 : index
    %3 = vector.load %arg3[%c0_3, %c0_4] : memref<1x8xf32, #tpu.memory_space<vmem>>, vector<1x8xf32>
    %4 = vector.broadcast %3 : vector<1x8xf32> to vector<2x8xf32>
    %5 = arith.addf %2, %4 : vector<2x8xf32>
    %cst_5 = arith.constant 0.000000e+00 : f32
    %6 = vector.broadcast %cst_5 : f32 to vector<2x8xf32>
    %7 = arith.cmpf ogt, %5, %6 : vector<2x8xf32>
    %cst_6 = arith.constant 2.000000e-01 : f32
    %8 = vector.broadcast %cst_6 : f32 to vector<2x8xf32>
    %9 = arith.mulf %8, %5 : vector<2x8xf32>
    %10 = arith.select %7, %5, %9 : vector<2x8xi1>, vector<2x8xf32>
    %c0_7 = arith.constant 0 : index
    %c0_8 = arith.constant 0 : index
    %11 = vector.load %arg4[%c0_7, %c0_8] : memref<8x2048xf32, #tpu.memory_space<vmem>>, vector<8x2048xf32>
    %cst_9 = arith.constant dense<0.000000e+00> : vector<2x2048xf32>
    %12 = tpu.matmul %10, %11, %cst_9 {dimension_numbers = #tpu.dot_dimension_numbers<[1], [0], [0], [1], [0, 0, 1, 1], [], []>} : vector<2x8xf32>, vector<8x2048xf32>, vector<2x2048xf32> -> vector<2x2048xf32>
    %c0_10 = arith.constant 0 : index
    %c0_11 = arith.constant 0 : index
    %13 = vector.load %arg5[%c0_10, %c0_11] : memref<1x2048xf32, #tpu.memory_space<vmem>>, vector<1x2048xf32>
    %14 = vector.broadcast %13 : vector<1x2048xf32> to vector<2x2048xf32>
    %15 = arith.addf %12, %14 : vector<2x2048xf32>
    %c0_12 = arith.constant 0 : index
    %c0_13 = arith.constant 0 : index
    %16 = vector.load %arg6[%c0_12, %c0_13] : memref<2x2048xf32, #tpu.memory_space<vmem>>, vector<2x2048xf32>
    tpu.vector_store %arg6[%c0_12, %c0_13], %15 {strides = array<i32>} : memref<2x2048xf32, #tpu.memory_space<vmem>>, vector<2x2048xf32>,
    return
  }
  func.func @transform_0(%arg0: i32) -> (i32, i32) {
    %c0_i32 = arith.constant 0 : i32
    %c0_i32_0 = arith.constant 0 : i32
    %c0_i32_1 = arith.constant 0 : i32
    return %c0_i32, %c0_i32_0 : i32, i32
  }
  func.func @transform_1(%arg0: i32) -> (i32, i32) {
    %c0_i32 = arith.constant 0 : i32
    %c0_i32_0 = arith.constant 0 : i32
    %c0_i32_1 = arith.constant 0 : i32
    return %c0_i32, %c0_i32_0 : i32, i32
  }
  func.func @transform_2(%arg0: i32) -> (i32, i32) {
    %c0_i32 = arith.constant 0 : i32
    %c0_i32_0 = arith.constant 0 : i32
    %c0_i32_1 = arith.constant 0 : i32
    return %c0_i32, %c0_i32_0 : i32, i32
  }
  func.func @transform_3(%arg0: i32) -> (i32, i32) {
    %c0_i32 = arith.constant 0 : i32
    %c0_i32_0 = arith.constant 0 : i32
    return %c0_i32, %arg0 : i32, i32
  }
  func.func @transform_4(%arg0: i32) -> (i32, i32) {
    %c0_i32 = arith.constant 0 : i32
    %c0_i32_0 = arith.constant 0 : i32
    return %c0_i32, %arg0 : i32, i32
  }
  func.func @transform_5(%arg0: i32) -> (i32, i32) {
    %c0_i32 = arith.constant 0 : i32
    %c0_i32_0 = arith.constant 0 : i32
    return %c0_i32, %arg0 : i32, i32
  }
}

</mosaic_0001>

<bundles_post_ra>
// kernel: tpu_custom_call.1
= control target key start
LH: loop header
LB: loop body
LE: loop exit
PB: predicated region body
PF: predicated region fallthrough
CT: control target
= control target key end

     0   :  { %10 = vsyncpa [#allocation3], 0  ;;  %s1073_s0 = inlined_call_operand.vmem [shape: f32[2,32], index: 0, kind: input, shape index: {}]   ;;  %s1074_s1 = inlined_call_operand.vmem [shape: f32[32,8], index: 1, kind: input, shape index: {}]   ;;  %s1075_s2 = inlined_call_operand.vmem [shape: f32[1,8], index: 2, kind: input, shape index: {}]   ;;  %s1076_s3 = inlined_call_operand.hbm [shape: f32[8,2048], index: 3, kind: input, shape index: {}]   ;;  %s1077_s4 = inlined_call_operand.vmem [shape: f32[1,2048], index: 4, kind: input, shape index: {}]   ;;  %s1078_s5 = inlined_call_operand.hbm [shape: f32[2,2048], index: 5, kind: output, shape index: {}]  }
   0x1   :  { %11 = vsyncpa [#allocation4], 0  ;;  %s976_s18 = smov [#allocation2]  }
   0x2   :  { %s24_s19 = sshll.u32 %s976_s18, 4  ;;  %s25_s19 = int_to_ptr.vmem [resolvable:$true] %s24_s19 }
   0x3   :  { %s940_s20 = scalar_lea.vmem %s25_s19, 2048  ;;  %p945_p1 = scmp.lt.s32.totalorder %s25_s19, %s25_s19 }
   0x4   :  { %p941_p0 = scmp.ne.s32.totalorder %s25_s19, %s940_s20  ;;  %p946_p2 = scmp.lt.s32.totalorder %s940_s20, %s940_s20 }
   0x6   :  { %p947_p3 = por %p946_p2, %p945_p1 }
   0x8   :  { %p948_p4 = pnand %p947_p3, %p941_p0 }
   0xa   :  { %951 = shalt.err (!%p948_p4)
}
   0xb   :  { %27 = dma.hbm_to_vmem [thread:$0]  %s1076_s3, 2048, %s25_s19, [#allocation3]  }
   0xc   :  { %972 = dma.done.wait [#allocation3], 2048  }
   0xd   :  { %973 = vsyncadd [#allocation3], 4294965248  ;;  %v977_v0 = vmov 0.0   ;;  %vm978_vm0 = vmmov 0   ;;  %v37_v1 = vld [vmem:[%s1074_s1 + $0x18] sm:$0xff]  ;;  %v36_v2 = vld [vmem:[%s1074_s1 + $0x10] sm:$0xff]  ;;  %v142_v28 = vlaneseq }
   0xe   :  { %916 = vmatprep.subr.mxu0 %v977_v0  ;;  %924 = vmatprep.mubr.msk.f32.mxu0 %vm978_vm0, %v977_v0  ;;  %v35_v3 = vld [vmem:[%s1074_s1 + $0x8] sm:$0xff]  ;;  %v34_v4 = vld [vmem:[%s1074_s1] sm:$0xff]  ;;  %vm45_vm1 = vcmask 261120   ;;  %v129_v7 = vld [vmem:[#allocation2 + $0x38] sm:$0xff]  ;;  %vm222_vm3 = vcmask 64512  }
   0xf   :  { %290 = vmatprep.mubr.f32.mxu1 %v977_v0  ;;  %917 = vmatpush3.msra.mxu0 %v37_v1  ;;  %v33_v5 = vld [vmem:[%s1073_s0] sm:$0x3]  ;;  %v123_v6 = vld [vmem:[#allocation2 + $0x8] sm:$0xff]  ;;  %v128_v9 = vld [vmem:[#allocation2 + $0x30] sm:$0xff]  ;;  %v1053_v29 = vshrl.u32 %v142_v28, 7 }
  0x10   :  { %918 = vmatprep.subr.mxu0 %v977_v0  ;;  %256 = vmatprep.subr.mxu1 %v123_v6  ;;  %v122_v8 = vld [vmem:[#allocation2] sm:$0xff]  ;;  %v125_v10 = vld [vmem:[#allocation2 + $0x18] sm:$0xff]  ;;  %v124_v17 = vld [vmem:[#allocation2 + $0x10] sm:$0xff]  ;;  %v979_v33 = vmov 1983009808  }
  0x11   :  { %919 = vmatpush3.msra.mxu0 %v36_v2  ;;  %257 = vmatpush1.msra.mxu1 %v122_v8  ;;  %v133_v11 = vld [vmem:[#allocation2 + $0x58] sm:$0xff]  ;;  %v901_v12 = vld [vmem:[%s1075_s2] ss:$0 sm:$0xff]  ;;  %v127_v19 = vld [vmem:[#allocation2 + $0x28] sm:$0xff]  ;;  %v148_v30 = vsub.s32 1, %v1053_v29  ;;  %v144_v31 = vsub.s32 0, %v1053_v29  ;;  %v813_v34 = vunpack.c.l.s4 %v979_v33 }
  0x12   :  { %920 = vmatprep.subr.mxu0 %v977_v0  ;;  %327 = vmatprep.subr.mxu1 %v125_v10  ;;  %v132_v20 = vld [vmem:[#allocation2 + $0x50] sm:$0xff]  ;;  %v137_v21 = vld [vmem:[#allocation2 + $0x78] sm:$0xff]  ;;  %v126_v22 = vld [vmem:[#allocation2 + $0x20] sm:$0xff]  ;;  %v172_v35 = vsub.s32 7, %v1053_v29  ;;  %v152_v37 = vsub.s32 2, %v1053_v29  ;;  %v156_v38 = vsub.s32 3, %v1053_v29 }
  0x13   :  { %921 = vmatpush3.msra.mxu0 %v35_v3  ;;  %v131_v23 = vld [vmem:[#allocation2 + $0x48] sm:$0xff]  ;;  %v136_v24 = vld [vmem:[#allocation2 + $0x70] sm:$0xff]  ;;  %v130_v25 = vld [vmem:[#allocation2 + $0x40] sm:$0xff]  ;;  %v168_v40 = vsub.s32 6, %v1053_v29  ;;  %v814_v44 = vunpack.c.0.s8 %v813_v34  ;;  %v160_v47 = vsub.s32 4, %v1053_v29  ;;  %v164_v51 = vsub.s32 5, %v1053_v29 }
  0x14   :  { %922 = vmatprep.subr.mxu0 %v977_v0  ;;  %v135_v26 = vld [vmem:[#allocation2 + $0x68] sm:$0xff]  ;;  %v134_v27 = vld [vmem:[#allocation2 + $0x60] sm:$0xff] }
  0x15   :  { %923 = vmatpush3.msra.mxu0 %v34_v4  ;;  %v138_v32 = vld [vmem:[%s1077_s4] sm:$0xff]  ;;  %v139_v56 = vld [vmem:[%s1077_s4 + $0x8] sm:$0xff]  ;;  %v817_v57 = vsub.s32 %v814_v44, %v1053_v29  ;;  %s980_s4 = smov [#allocation5]  }
  0x16   :  { %925 = vmatmul.mubr.msk.f32.vlgmr.msra.gmra.mxu0 %vm45_vm1, %v33_v5  ;;  %469 = vmatprep.subr.mxu0 %v129_v7  ;;  %v149_v36 = vrot.slane %v138_v32, %v148_v30  ;;  %v145_v42 = vrot.slane %v138_v32, %v144_v31  ;;  %v173_v45 = vrot.slane %v138_v32, %v172_v35  ;;  %s892_s10 = sshll.u32 %s980_s4, 4  ;;  %s893_s10 = int_to_ptr.vmem [resolvable:$true] %s892_s10 }
  0x17   :  { %503 = vmatprep.mubr.f32.mxu0 %v977_v0  ;;  %470 = vmatpush1.msra.mxu0 %v128_v9  ;;  %v153_v49 = vrot.slane %v138_v32, %v152_v37  ;;  %v157_v50 = vrot.slane %v138_v32, %v156_v38  ;;  %v169_v52 = vrot.slane %v138_v32, %v168_v40  ;;  %s952_s11 = scalar_lea.vmem %s893_s10, 512  ;;  %p957_p6 = scmp.lt.s32.totalorder %s893_s10, %s893_s10 }
  0x18   :  { %611 = vmatprep.subr.mxu0 %v133_v11  ;;  %v189_v60 = vrot.slane %v139_v56, %v156_v38  ;;  %v161_v62 = vrot.slane %v138_v32, %v160_v47  ;;  %v165_v2 = vrot.slane %v138_v32, %v164_v51  ;;  %v185_v4 = vrot.slane %v139_v56, %v152_v37  ;;  %p953_p5 = scmp.ne.s32.totalorder %s893_s10, %s952_s11  ;;  %p958_p7 = scmp.lt.s32.totalorder %s952_s11, %s952_s11 }
  0x19   :  { %v205_v8 = vrot.slane %v139_v56, %v172_v35  ;;  %v197_v28 = vrot.slane %v139_v56, %v164_v51 }
  0x1a   :  { %p959_p8 = por %p958_p7, %p957_p6 }
  0x1c   :  { %p960_p9 = pnand %p959_p8, %p953_p5 }
  0xd6   :  { %v115_v13 = vpop.f32.mrf.mxu0 }
  0xd7   :  { %v116_v14 = vadd.f32 %v901_v12, %v115_v13  ;;  %v177_v12 = vrot.slane %v139_v56, %v144_v31  ;;  %v181_v13 = vrot.slane %v139_v56, %v148_v30 }
  0xd8   :  { %v926_v15 = vpop.f32.mrf.mxu0 }
  0xd9   :  { %vm119_vm2 = vcmp.gt.f32.partialorder %v116_v14, 0.0  ;;  %v120_v16 = vmul.f32 0.2, %v116_v14 }
  0xdb   :  { %v121_v18 = vsel %vm119_vm2, %v116_v14, %v120_v16 }
  0xdc   :  { %903 = vmatmul.mubr.msk.f32.vlgmr.msra.gmra.mxu1 %vm222_vm3, %v121_v18  ;;  %906 = vmatmul.mubr.msk.f32.vlgmr.msra.gmra.mxu0 %vm222_vm3, %v121_v18 }
  0xdd   :  { %328 = vmatpush1.msra.mxu1 %v124_v17  ;;  %361 = vmatprep.mubr.f32.mxu1 %v977_v0 }
  0xde   :  { %398 = vmatprep.subr.mxu1 %v127_v19  ;;  %612 = vmatpush1.msra.mxu0 %v132_v20 }
  0xdf   :  { %645 = vmatprep.mubr.f32.mxu0 %v977_v0  ;;  %753 = vmatprep.subr.mxu0 %v137_v21 }
  0xe0   :  { %904 = vmatmul.mubr.msk.f32.vlgmr.msra.gmra.mxu1 %vm222_vm3, %v121_v18  ;;  %908 = vmatmul.mubr.msk.f32.vlgmr.msra.gmra.mxu0 %vm222_vm3, %v121_v18 }
  0xe1   :  { %399 = vmatpush1.msra.mxu1 %v126_v22  ;;  %432 = vmatprep.mubr.f32.mxu1 %v977_v0  ;;  %v201_v22 = vrot.slane %v139_v56, %v168_v40 }
  0xe2   :  { %540 = vmatprep.subr.mxu1 %v131_v23  ;;  %754 = vmatpush1.msra.mxu0 %v136_v24 }
  0xe3   :  { %787 = vmatprep.mubr.f32.mxu0 %v977_v0 }
  0xe4   :  { %905 = vmatmul.mubr.msk.f32.vlgmr.msra.gmra.mxu1 %vm222_vm3, %v121_v18  ;;  %910 = vmatmul.mubr.msk.f32.vlgmr.msra.gmra.mxu0 %vm222_vm3, %v121_v18 }
  0xe5   :  { %541 = vmatpush1.msra.mxu1 %v130_v25  ;;  %574 = vmatprep.mubr.f32.mxu1 %v977_v0 }
  0xe6   :  { %682 = vmatprep.subr.mxu1 %v135_v26 }
  0xe8   :  { %907 = vmatmul.mubr.msk.f32.vlgmr.msra.gmra.mxu1 %vm222_vm3, %v121_v18 }
  0xe9   :  { %683 = vmatpush1.msra.mxu1 %v134_v27  ;;  %716 = vmatprep.mubr.f32.mxu1 %v977_v0  ;;  %v193_v27 = vrot.slane %v139_v56, %v160_v47 }
  0xec   :  { %909 = vmatmul.mubr.msk.f32.vlgmr.msra.gmra.mxu1 %vm222_vm3, %v121_v18 }
 0x19c   :  { %v292_v39 = vpop.f32.mrf.mxu1  ;;  %v505_v41 = vpop.f32.mrf.mxu0 }
 0x19d   :  { %v293_v55 = vadd.f32 %v292_v39, %v145_v42  ;;  %v506_v3 = vadd.f32 %v505_v41, %v169_v52 }
 0x19e   :  { %v294_v43 = vpop.f32.mrf.mxu1  ;;  %v507_v46 = vpop.f32.mrf.mxu0 }
 0x19f   :  { %v295_v48 = vadd.f32 %v294_v43, %v149_v36  ;;  %v508_v58 = vadd.f32 %v507_v46, %v173_v45 }
 0x1a0   :  { %v363_v53 = vpop.f32.mrf.mxu1  ;;  %v647_v54 = vpop.f32.mrf.mxu0 }
 0x1a1   :  { %v810_v63 = vcombine.low %v293_v55, %v295_v48  ;;  %v364_v0 = vadd.f32 %v363_v53, %v153_v49  ;;  %v828_v9 = vcombine.low %v506_v3, %v508_v58  ;;  %v648_v18 = vadd.f32 %v647_v54, %v185_v4 }
 0x1a2   :  { %v365_v59 = vpop.f32.mrf.mxu1  ;;  %v649_v61 = vpop.f32.mrf.mxu0 }
 0x1a3   :  { %v366_v1 = vadd.f32 %v365_v59, %v157_v50  ;;  %v650_v10 = vadd.f32 %v649_v61, %v189_v60  ;;  %v818_v14 = vrot.slane %v810_v63, %v817_v57  ;;  %v842_v24 = vrot.slane %v828_v9, %v817_v57 }
 0x1a4   :  { %v434_v5 = vpop.f32.mrf.mxu1  ;;  %v789_v6 = vpop.f32.mrf.mxu0 }
 0x1a5   :  { %v811_v7 = vcombine.low %v364_v0, %v366_v1  ;;  %v435_v16 = vadd.f32 %v434_v5, %v161_v62  ;;  %v845_v25 = vcombine.low %v648_v18, %v650_v10  ;;  %v790_v34 = vadd.f32 %v789_v6, %v201_v22 }
 0x1a6   :  { %v436_v11 = vpop.f32.mrf.mxu1  ;;  %v791_v19 = vpop.f32.mrf.mxu0 }
 0x1a7   :  { %v825_v15 = vrot.slane %v811_v7, %v817_v57  ;;  %v437_v17 = vadd.f32 %v436_v11, %v165_v2  ;;  %v792_v32 = vadd.f32 %v791_v19, %v205_v8  ;;  %v859_v37 = vrot.slane %v845_v25, %v817_v57 }
 0x1a8   :  { %v576_v20 = vpop.f32.mrf.mxu1 }
 0x1a9   :  { %v826_v21 = vcombine.low %v818_v14, %v825_v15  ;;  %v827_v23 = vcombine.low %v435_v16, %v437_v17  ;;  %v577_v31 = vadd.f32 %v576_v20, %v177_v12  ;;  %v862_v39 = vcombine.low %v790_v34, %v792_v32 }
 0x1aa   :  { %v578_v26 = vpop.f32.mrf.mxu1 }
 0x1ab   :  { %882 = vst [vmem:[#allocation5] sm:$0xff] %v826_v21  ;;  %v835_v29 = vrot.slane %v827_v23, %v817_v57  ;;  %v579_v30 = vadd.f32 %v578_v26, %v181_v13  ;;  %v876_v45 = vrot.slane %v862_v39, %v817_v57 }
 0x1ac   :  { %v718_v33 = vpop.f32.mrf.mxu1 }
 0x1ad   :  { %v843_v35 = vcombine.low %v835_v29, %v842_v24  ;;  %v844_v36 = vcombine.low %v577_v31, %v579_v30  ;;  %v719_v41 = vadd.f32 %v718_v33, %v193_v27 }
 0x1ae   :  { %v720_v38 = vpop.f32.mrf.mxu1 }
 0x1af   :  { %883 = vst [vmem:[#allocation5 + $0x8] sm:$0xff] %v843_v35  ;;  %v852_v40 = vrot.slane %v844_v36, %v817_v57  ;;  %v721_v42 = vadd.f32 %v720_v38, %v197_v28 }
 0x1b1   :  { %v860_v43 = vcombine.low %v852_v40, %v859_v37  ;;  %v861_v44 = vcombine.low %v719_v41, %v721_v42 }
 0x1b3   :  { %884 = vst [vmem:[#allocation5 + $0x10] sm:$0xff] %v860_v43  ;;  %v869_v46 = vrot.slane %v861_v44, %v817_v57 }
 0x1b5   :  { %v877_v47 = vcombine.low %v869_v46, %v876_v45 }
 0x1b7   :  { %885 = vst [vmem:[#allocation5 + $0x18] sm:$0xff] %v877_v47 }
 0x1b8   :  { %963 = shalt.err (!%p960_p9)
}
 0x1b9   :  { %895 = dma.vmem_to_hbm [thread:$0]  %s893_s10, 512, %s1078_s5, [#allocation4]  }
 0x1ba   :  { %974 = dma.done.wait [#allocation4], 512  }
 0x1bb   :  { %975 = vsyncadd [#allocation4], 4294966784 }
 0x1bc   :  { %899 = vsyncpa [#allocation3], 1 }
 0x1bd   :  { %900 = vsyncpa [#allocation4], 1 }

</bundles_post_ra>
